<compile_context>
chip_gen: v5e
topology: v5e:2x2
jax: 0.10.0
libtpu: 0.0.40
codegen_flags: <defaults>
</compile_context>

<pallas_src>
import functools

import jax
import jax.numpy as jnp
from jax import lax
from jax.experimental import pallas as pl
from jax.experimental.pallas import tpu as pltpu


def _phase_taps(k, d, s, pad):
    """Per output phase r in [0, s): list of (flipped tap index i, input offset m)."""
    phases = []
    for r in range(s):
        taps = []
        for i in range(k):
            t = r + i * d - pad
            if t % s == 0:
                taps.append((i, t // s))
        phases.append(taps)
    return phases


def _deconv_subpixel_kernel(x_ref, w_ref, b_ref, o_ref, xcol_ref, *, phase_starts):
    """One batch element; all sh*sw phases.

    x_ref:    (1, Cin, Hp*Wp)        padded dense input, spatially flattened
    w_ref:    (P, Cout, K)           per-phase packed (zero-padded) weights
    b_ref:    (Cout, 1)              bias
    o_ref:    (1, P, Cout, Qh*Wp)    per-phase channel-major output slabs
    xcol_ref: (K, Qh*Wp)             VMEM scratch: folded contraction operand
    """
    cin = x_ref.shape[1]
    l = xcol_ref.shape[1]
    bias = b_ref[...].astype(jnp.float32)            # (Cout, 1) -> lane broadcast
    for p, starts in enumerate(phase_starts):        # static python loops
        for t, s in enumerate(starts):
            # Contiguous slab: Qh full-width rows; W-tap shift folded into `s`.
            xcol_ref[t * cin:(t + 1) * cin, :] = x_ref[0, :, s:s + l]
        acc = jnp.dot(w_ref[p], xcol_ref[...],
                      preferred_element_type=jnp.float32)   # (Cout, Qh*Wp)
        o_ref[0, p] = (acc + bias).astype(o_ref.dtype)


def conv_transpose2d_pallas(x, weight, bias, stride, padding, output_padding,
                            dilation):
    """x: NCHW, weight: (Cin, Cout, KH, KW) (torch ConvTranspose2d layout)."""
    # TODO(synk): groups > 1 and the output_size -> _output_padding path are not
    # implemented; this covers the default forward(x) call with groups=1.
    sh, sw = stride
    ph, pw = padding
    oph, opw = output_padding
    dh, dw = dilation
    n, cin, h, w = x.shape
    wcin, cout, kh, kw = weight.shape
    assert wcin == cin

    hout = (h - 1) * sh - 2 * ph + dh * (kh - 1) + oph + 1
    wout = (w - 1) * sw - 2 * pw + dw * (kw - 1) + opw + 1

    pad_t = dh * (kh - 1) - ph
    pad_l = dw * (kw - 1) - pw
    assert pad_t >= 0 and pad_l >= 0, "padding > dilation*(k-1) unsupported"

    # --- static sub-pixel tap tables (trace-time Python) ---
    phases_h = _phase_taps(kh, dh, sh, pad_t)
    phases_w = _phase_taps(kw, dw, sw, pad_l)
    th = max(1, max(len(t) for t in phases_h))
    tw = max(1, max(len(t) for t in phases_w))
    qh = -(-hout // sh)          # ceil(Hout/sh): output rows per phase (padded)
    qw = -(-wout // sw)

    ms_h = [m for taps in phases_h for _, m in taps] or [0]
    ms_w = [m for taps in phases_w for _, m in taps] or [0]
    pad_lo_h = max(0, -min(ms_h))
    pad_hi_h = max(0, (qh - 1) + max(ms_h) - (h - 1))
    pad_lo_w = max(0, -min(ms_w))
    pad_hi_w = max(0, (qw - 1) + max(ms_w) - (w - 1))
    # +1 safety row so every tap's full-width contiguous slab stays in bounds.
    hp = h + pad_lo_h + pad_hi_h + 1
    wp = w + pad_lo_w + pad_hi_w

    # --- glue: tiny halo pad of the DENSE input (no zero-dilation, no NHWC
    # transpose), then a free flatten of the contiguous spatial dims. ---
    # TODO(synk): the constant halo pad could be folded into index_map+masking.
    x_pad = jnp.pad(x, ((0, 0), (0, 0),
                        (pad_lo_h, pad_hi_h + 1), (pad_lo_w, pad_hi_w)))
    x_flat = x_pad.reshape(n, cin, hp * wp)

    # --- per-phase packed weight (P, Cout, K) and flat tap start offsets ---
    p_total = sh * sw
    k_dim = th * tw * cin
    zero_blk = jnp.zeros((cout, cin), weight.dtype)
    w_rows = []
    phase_starts = []
    for rh in range(sh):
        taps_h = phases_h[rh]
        for rw in range(sw):
            taps_w = phases_w[rw]
            blocks, starts = [], []
            for a in range(th):
                for b in range(tw):
                    if a < len(taps_h) and b < len(taps_w):
                        i, mh = taps_h[a]
                        j, mw = taps_w[b]
                        blocks.append(jnp.transpose(
                            weight[:, :, kh - 1 - i, kw - 1 - j]))  # (Cout, Cin)
                        starts.append((mh + pad_lo_h) * wp + (mw + pad_lo_w))
                    else:                       # zero-padded dummy tap
                        blocks.append(zero_blk)
                        starts.append(0)
            w_rows.append(jnp.concatenate(blocks, axis=1))          # (Cout, K)
            phase_starts.append(tuple(starts))
    w_packed = jnp.stack(w_rows, axis=0)                            # (P, Cout, K)
    # TODO(synk): optional bf16 cast of w_packed/x (v6e/v7x) kept off to stay
    # bit-comparable with the f32 reference.

    if bias is None:
        bias = jnp.zeros((cout,), x.dtype)
    b2d = bias.reshape(cout, 1).astype(x.dtype)

    l_flat = qh * wp
    kernel = functools.partial(_deconv_subpixel_kernel,
                               phase_starts=tuple(phase_starts))

    # Explicit VMEM budget: double-buffered in/out blocks + resident
    # weight/bias/scratch, with headroom (kept under v7x's 64 MiB).
    isz = jnp.dtype(x.dtype).itemsize
    in_blk = cin * hp * wp * isz
    out_blk = p_total * cout * l_flat * isz
    aux = (p_total * cout * k_dim + cout + k_dim * l_flat) * isz
    vmem_limit = int(min(max(2 * (in_blk + out_blk) + aux + (4 << 20), 8 << 20),
                         64 << 20))

    out = pl.pallas_call(
        kernel,
        out_shape=jax.ShapeDtypeStruct((n, p_total, cout, l_flat), x.dtype),
        grid_spec=pltpu.PrefetchScalarGridSpec(
            num_scalar_prefetch=0,
            grid=(n,),
            in_specs=[
                pl.BlockSpec((1, cin, hp * wp), lambda bb: (bb, 0, 0)),
                pl.BlockSpec((p_total, cout, k_dim), lambda bb: (0, 0, 0)),
                pl.BlockSpec((cout, 1), lambda bb: (0, 0)),
            ],
            out_specs=pl.BlockSpec((1, p_total, cout, l_flat),
                                   lambda bb: (bb, 0, 0, 0)),
            scratch_shapes=[pltpu.VMEM((k_dim, l_flat), x.dtype)],
        ),
        compiler_params=pltpu.CompilerParams(
            dimension_semantics=("parallel",),
            vmem_limit_bytes=vmem_limit),
    )(x_flat, w_packed, b2d)

    # --- glue: crop garbage columns + depth-to-space (pixel shuffle) ---
    out = out.reshape(n, sh, sw, cout, qh, wp)[..., :qw]
    out = jnp.transpose(out, (0, 3, 4, 1, 5, 2))     # (N, Cout, Qh, sh, Qw, sw)
    out = out.reshape(n, cout, qh * sh, qw * sw)
    return out[:, :, :hout, :wout]


def reference_conv_transpose2d(x, weight, bias, stride, padding,
                               output_padding, dilation):
    """Pure-JAX reference (lax.conv_general_dilated), matches F.conv_transpose2d."""
    sh, sw = stride
    ph, pw = padding
    oph, opw = output_padding
    dh, dw = dilation
    kh, kw = weight.shape[2], weight.shape[3]
    pad_t = dh * (kh - 1) - ph
    pad_b = dh * (kh - 1) - ph + oph
    pad_l = dw * (kw - 1) - pw
    pad_r = dw * (kw - 1) - pw + opw
    w_conv = jnp.transpose(jnp.flip(weight, (2, 3)), (1, 0, 2, 3))  # OIHW
    out = lax.conv_general_dilated(
        x, w_conv,
        window_strides=(1, 1),
        padding=((pad_t, pad_b), (pad_l, pad_r)),
        lhs_dilation=(sh, sw),
        rhs_dilation=(dh, dw),
        dimension_numbers=("NCHW", "OIHW", "NCHW"))
    return out + bias[None, :, None, None]


if __name__ == "__main__":
    # MetaConvTranspose2d(4, 8, kernel_size=3, stride=2, padding=1, bias=True)
    in_ch, out_ch, ksize = 4, 8, 3
    stride, padding, output_padding, dilation = (2, 2), (1, 1), (0, 0), (1, 1)

    key = jax.random.PRNGKey(0)
    kx, kw_, kb = jax.random.split(key, 3)
    x = jax.random.normal(kx, (2, in_ch, 16, 16), jnp.float32)
    # torch ConvTranspose2d weight layout: (in_ch, out_ch/groups, KH, KW)
    bound = 1.0 / jnp.sqrt(float(out_ch * ksize * ksize))
    weight = jax.random.uniform(kw_, (in_ch, out_ch, ksize, ksize),
                                jnp.float32, -bound, bound)
    bias = jax.random.uniform(kb, (out_ch,), jnp.float32, -bound, bound)

    fwd = jax.jit(conv_transpose2d_pallas, static_argnums=(3, 4, 5, 6))
    out = fwd(x, weight, bias, stride, padding, output_padding, dilation)
    out = jax.block_until_ready(out)

    ref = reference_conv_transpose2d(x, weight, bias, stride, padding,
                                     output_padding, dilation)
    assert out.shape == (2, out_ch, 31, 31), out.shape
    assert jnp.allclose(out, ref, atol=1e-4, rtol=1e-4), float(
        jnp.max(jnp.abs(out - ref)))

    print("KERNEL_OK")
</pallas_src>

<mosaic_0001>
module attributes {stable_mosaic.version = 11 : i64} {
  func.func @_deconv_subpixel_kernel(%arg0: i32, %arg1: memref<1x4x306xf32, #tpu.memory_space<vmem>>, %arg2: memref<4x8x16xf32, #tpu.memory_space<vmem>>, %arg3: memref<8x1xf32, #tpu.memory_space<vmem>>, %arg4: memref<1x4x8x272xf32, #tpu.memory_space<vmem>>, %arg5: memref<16x272xf32, #tpu.memory_space<vmem>>) attributes {dimension_semantics = [#tpu.dimension_semantics<parallel>], iteration_bounds = array<i64: 2>, scalar_prefetch = 0 : i64, scratch_operands = 1 : i64, tpu.core_type = #tpu.core_type<tc>, window_params = [{transform_indices = @transform_0, window_bounds = array<i64: 1, 4, 306>}, {pipeline_mode = #tpu.pipeline_mode<synchronous>, transform_indices = @transform_1, window_bounds = array<i64: 4, 8, 16>}, {pipeline_mode = #tpu.pipeline_mode<synchronous>, transform_indices = @transform_2, window_bounds = array<i64: 8, 1>}, {transform_indices = @transform_3, window_bounds = array<i64: 1, 4, 8, 272>}]} {
    %c0 = arith.constant 0 : index
    %c0_0 = arith.constant 0 : index
    %0 = vector.load %arg3[%c0, %c0_0] : memref<8x1xf32, #tpu.memory_space<vmem>>, vector<8x1xf32>
    %c0_1 = arith.constant 0 : index
    %c0_2 = arith.constant 0 : index
    %c0_3 = arith.constant 0 : index
    %1 = vector.load %arg1[%c0_1, %c0_2, %c0_3] : memref<1x4x306xf32, #tpu.memory_space<vmem>>, vector<1x4x272xf32>
    %2 = vector.shape_cast %1 : vector<1x4x272xf32> to vector<4x272xf32>
    %c0_4 = arith.constant 0 : index
    %c0_5 = arith.constant 0 : index
    %3 = vector.load %arg5[%c0_4, %c0_5] : memref<16x272xf32, #tpu.memory_space<vmem>>, vector<4x272xf32>
    tpu.vector_store %arg5[%c0_4, %c0_5], %2 {strides = array<i32>} : memref<16x272xf32, #tpu.memory_space<vmem>>, vector<4x272xf32>,
    %c0_6 = arith.constant 0 : index
    %c0_7 = arith.constant 0 : index
    %c0_8 = arith.constant 0 : index
    %4 = vector.load %arg1[%c0_6, %c0_7, %c0_8] : memref<1x4x306xf32, #tpu.memory_space<vmem>>, vector<1x4x272xf32>
    %5 = vector.shape_cast %4 : vector<1x4x272xf32> to vector<4x272xf32>
    %c4 = arith.constant 4 : index
    %c0_9 = arith.constant 0 : index
    %6 = vector.load %arg5[%c4, %c0_9] : memref<16x272xf32, #tpu.memory_space<vmem>>, vector<4x272xf32>
    tpu.vector_store %arg5[%c4, %c0_9], %5 {strides = array<i32>} : memref<16x272xf32, #tpu.memory_space<vmem>>, vector<4x272xf32>,
    %c0_10 = arith.constant 0 : index
    %c0_11 = arith.constant 0 : index
    %c0_12 = arith.constant 0 : index
    %7 = vector.load %arg1[%c0_10, %c0_11, %c0_12] : memref<1x4x306xf32, #tpu.memory_space<vmem>>, vector<1x4x272xf32>
    %8 = vector.shape_cast %7 : vector<1x4x272xf32> to vector<4x272xf32>
    %c8 = arith.constant 8 : index
    %c0_13 = arith.constant 0 : index
    %9 = vector.load %arg5[%c8, %c0_13] : memref<16x272xf32, #tpu.memory_space<vmem>>, vector<4x272xf32>
    tpu.vector_store %arg5[%c8, %c0_13], %8 {strides = array<i32>} : memref<16x272xf32, #tpu.memory_space<vmem>>, vector<4x272xf32>,
    %c0_14 = arith.constant 0 : index
    %c0_15 = arith.constant 0 : index
    %c0_16 = arith.constant 0 : index
    %10 = vector.load %arg1[%c0_14, %c0_15, %c0_16] : memref<1x4x306xf32, #tpu.memory_space<vmem>>, vector<1x4x272xf32>
    %11 = vector.shape_cast %10 : vector<1x4x272xf32> to vector<4x272xf32>
    %c12 = arith.constant 12 : index
    %c0_17 = arith.constant 0 : index
    %12 = vector.load %arg5[%c12, %c0_17] : memref<16x272xf32, #tpu.memory_space<vmem>>, vector<4x272xf32>
    tpu.vector_store %arg5[%c12, %c0_17], %11 {strides = array<i32>} : memref<16x272xf32, #tpu.memory_space<vmem>>, vector<4x272xf32>,
    %c0_18 = arith.constant 0 : index
    %c0_19 = arith.constant 0 : index
    %c0_20 = arith.constant 0 : index
    %13 = vector.load %arg2[%c0_18, %c0_19, %c0_20] : memref<4x8x16xf32, #tpu.memory_space<vmem>>, vector<1x8x16xf32>
    %14 = vector.shape_cast %13 : vector<1x8x16xf32> to vector<8x16xf32>
    %c0_21 = arith.constant 0 : index
    %c0_22 = arith.constant 0 : index
    %15 = vector.load %arg5[%c0_21, %c0_22] : memref<16x272xf32, #tpu.memory_space<vmem>>, vector<16x272xf32>
    %cst = arith.constant dense<0.000000e+00> : vector<8x272xf32>
    %16 = tpu.matmul %14, %15, %cst {dimension_numbers = #tpu.dot_dimension_numbers<[1], [0], [0], [1], [0, 0, 1, 1], [], []>} : vector<8x16xf32>, vector<16x272xf32>, vector<8x272xf32> -> vector<8x272xf32>
    %17 = vector.broadcast %0 : vector<8x1xf32> to vector<8x272xf32>
    %18 = arith.addf %16, %17 : vector<8x272xf32>
    %c0_23 = arith.constant 0 : index
    %c0_24 = arith.constant 0 : index
    %c0_25 = arith.constant 0 : index
    %c0_26 = arith.constant 0 : index
    %19 = vector.load %arg4[%c0_23, %c0_24, %c0_25, %c0_26] : memref<1x4x8x272xf32, #tpu.memory_space<vmem>>, vector<1x1x8x272xf32>
    %20 = vector.shape_cast %19 : vector<1x1x8x272xf32> to vector<8x272xf32>
    %21 = vector.shape_cast %18 : vector<8x272xf32> to vector<1x1x8x272xf32>
    tpu.vector_store %arg4[%c0_23, %c0_24, %c0_25, %c0_26], %21 {strides = array<i32>} : memref<1x4x8x272xf32, #tpu.memory_space<vmem>>, vector<1x1x8x272xf32>,
    %c0_27 = arith.constant 0 : index
    %c0_28 = arith.constant 0 : index
    %c0_29 = arith.constant 0 : index
    %22 = vector.load %arg1[%c0_27, %c0_28, %c0_29] : memref<1x4x306xf32, #tpu.memory_space<vmem>>, vector<1x4x272xf32>
    %23 = vector.shape_cast %22 : vector<1x4x272xf32> to vector<4x272xf32>
    %c0_30 = arith.constant 0 : index
    %c0_31 = arith.constant 0 : index
    %24 = vector.load %arg5[%c0_30, %c0_31] : memref<16x272xf32, #tpu.memory_space<vmem>>, vector<4x272xf32>
    tpu.vector_store %arg5[%c0_30, %c0_31], %23 {strides = array<i32>} : memref<16x272xf32, #tpu.memory_space<vmem>>, vector<4x272xf32>,
    %c0_32 = arith.constant 0 : index
    %c0_33 = arith.constant 0 : index
    %c1 = arith.constant 1 : index
    %25 = vector.load %arg1[%c0_32, %c0_33, %c1] : memref<1x4x306xf32, #tpu.memory_space<vmem>>, vector<1x4x272xf32>
    %26 = vector.shape_cast %25 : vector<1x4x272xf32> to vector<4x272xf32>
    %c4_34 = arith.constant 4 : index
    %c0_35 = arith.constant 0 : index
    %27 = vector.load %arg5[%c4_34, %c0_35] : memref<16x272xf32, #tpu.memory_space<vmem>>, vector<4x272xf32>
    tpu.vector_store %arg5[%c4_34, %c0_35], %26 {strides = array<i32>} : memref<16x272xf32, #tpu.memory_space<vmem>>, vector<4x272xf32>,
    %c0_36 = arith.constant 0 : index
    %c0_37 = arith.constant 0 : index
    %c0_38 = arith.constant 0 : index
    %28 = vector.load %arg1[%c0_36, %c0_37, %c0_38] : memref<1x4x306xf32, #tpu.memory_space<vmem>>, vector<1x4x272xf32>
    %29 = vector.shape_cast %28 : vector<1x4x272xf32> to vector<4x272xf32>
    %c8_39 = arith.constant 8 : index
    %c0_40 = arith.constant 0 : index
    %30 = vector.load %arg5[%c8_39, %c0_40] : memref<16x272xf32, #tpu.memory_space<vmem>>, vector<4x272xf32>
    tpu.vector_store %arg5[%c8_39, %c0_40], %29 {strides = array<i32>} : memref<16x272xf32, #tpu.memory_space<vmem>>, vector<4x272xf32>,
    %c0_41 = arith.constant 0 : index
    %c0_42 = arith.constant 0 : index
    %c0_43 = arith.constant 0 : index
    %31 = vector.load %arg1[%c0_41, %c0_42, %c0_43] : memref<1x4x306xf32, #tpu.memory_space<vmem>>, vector<1x4x272xf32>
    %32 = vector.shape_cast %31 : vector<1x4x272xf32> to vector<4x272xf32>
    %c12_44 = arith.constant 12 : index
    %c0_45 = arith.constant 0 : index
    %33 = vector.load %arg5[%c12_44, %c0_45] : memref<16x272xf32, #tpu.memory_space<vmem>>, vector<4x272xf32>
    tpu.vector_store %arg5[%c12_44, %c0_45], %32 {strides = array<i32>} : memref<16x272xf32, #tpu.memory_space<vmem>>, vector<4x272xf32>,
    %c1_46 = arith.constant 1 : index
    %c0_47 = arith.constant 0 : index
    %c0_48 = arith.constant 0 : index
    %34 = vector.load %arg2[%c1_46, %c0_47, %c0_48] : memref<4x8x16xf32, #tpu.memory_space<vmem>>, vector<1x8x16xf32>
    %35 = vector.shape_cast %34 : vector<1x8x16xf32> to vector<8x16xf32>
    %c0_49 = arith.constant 0 : index
    %c0_50 = arith.constant 0 : index
    %36 = vector.load %arg5[%c0_49, %c0_50] : memref<16x272xf32, #tpu.memory_space<vmem>>, vector<16x272xf32>
    %cst_51 = arith.constant dense<0.000000e+00> : vector<8x272xf32>
    %37 = tpu.matmul %35, %36, %cst_51 {dimension_numbers = #tpu.dot_dimension_numbers<[1], [0], [0], [1], [0, 0, 1, 1], [], []>} : vector<8x16xf32>, vector<16x272xf32>, vector<8x272xf32> -> vector<8x272xf32>
    %38 = vector.broadcast %0 : vector<8x1xf32> to vector<8x272xf32>
    %39 = arith.addf %37, %38 : vector<8x272xf32>
    %c0_52 = arith.constant 0 : index
    %c1_53 = arith.constant 1 : index
    %c0_54 = arith.constant 0 : index
    %c0_55 = arith.constant 0 : index
    %40 = vector.load %arg4[%c0_52, %c1_53, %c0_54, %c0_55] : memref<1x4x8x272xf32, #tpu.memory_space<vmem>>, vector<1x1x8x272xf32>
    %41 = vector.shape_cast %40 : vector<1x1x8x272xf32> to vector<8x272xf32>
    %42 = vector.shape_cast %39 : vector<8x272xf32> to vector<1x1x8x272xf32>
    tpu.vector_store %arg4[%c0_52, %c1_53, %c0_54, %c0_55], %42 {strides = array<i32>} : memref<1x4x8x272xf32, #tpu.memory_space<vmem>>, vector<1x1x8x272xf32>,
    %c0_56 = arith.constant 0 : index
    %c0_57 = arith.constant 0 : index
    %c0_58 = arith.constant 0 : index
    %43 = vector.load %arg1[%c0_56, %c0_57, %c0_58] : memref<1x4x306xf32, #tpu.memory_space<vmem>>, vector<1x4x272xf32>
    %44 = vector.shape_cast %43 : vector<1x4x272xf32> to vector<4x272xf32>
    %c0_59 = arith.constant 0 : index
    %c0_60 = arith.constant 0 : index
    %45 = vector.load %arg5[%c0_59, %c0_60] : memref<16x272xf32, #tpu.memory_space<vmem>>, vector<4x272xf32>
    tpu.vector_store %arg5[%c0_59, %c0_60], %44 {strides = array<i32>} : memref<16x272xf32, #tpu.memory_space<vmem>>, vector<4x272xf32>,
    %c0_61 = arith.constant 0 : index
    %c0_62 = arith.constant 0 : index
    %c0_63 = arith.constant 0 : index
    %46 = vector.load %arg1[%c0_61, %c0_62, %c0_63] : memref<1x4x306xf32, #tpu.memory_space<vmem>>, vector<1x4x272xf32>
    %47 = vector.shape_cast %46 : vector<1x4x272xf32> to vector<4x272xf32>
    %c4_64 = arith.constant 4 : index
    %c0_65 = arith.constant 0 : index
    %48 = vector.load %arg5[%c4_64, %c0_65] : memref<16x272xf32, #tpu.memory_space<vmem>>, vector<4x272xf32>
    tpu.vector_store %arg5[%c4_64, %c0_65], %47 {strides = array<i32>} : memref<16x272xf32, #tpu.memory_space<vmem>>, vector<4x272xf32>,
    %c0_66 = arith.constant 0 : index
    %c0_67 = arith.constant 0 : index
    %c17 = arith.constant 17 : index
    %49 = vector.load %arg1[%c0_66, %c0_67, %c17] : memref<1x4x306xf32, #tpu.memory_space<vmem>>, vector<1x4x272xf32>
    %50 = vector.shape_cast %49 : vector<1x4x272xf32> to vector<4x272xf32>
    %c8_68 = arith.constant 8 : index
    %c0_69 = arith.constant 0 : index
    %51 = vector.load %arg5[%c8_68, %c0_69] : memref<16x272xf32, #tpu.memory_space<vmem>>, vector<4x272xf32>
    tpu.vector_store %arg5[%c8_68, %c0_69], %50 {strides = array<i32>} : memref<16x272xf32, #tpu.memory_space<vmem>>, vector<4x272xf32>,
    %c0_70 = arith.constant 0 : index
    %c0_71 = arith.constant 0 : index
    %c0_72 = arith.constant 0 : index
    %52 = vector.load %arg1[%c0_70, %c0_71, %c0_72] : memref<1x4x306xf32, #tpu.memory_space<vmem>>, vector<1x4x272xf32>
    %53 = vector.shape_cast %52 : vector<1x4x272xf32> to vector<4x272xf32>
    %c12_73 = arith.constant 12 : index
    %c0_74 = arith.constant 0 : index
    %54 = vector.load %arg5[%c12_73, %c0_74] : memref<16x272xf32, #tpu.memory_space<vmem>>, vector<4x272xf32>
    tpu.vector_store %arg5[%c12_73, %c0_74], %53 {strides = array<i32>} : memref<16x272xf32, #tpu.memory_space<vmem>>, vector<4x272xf32>,
    %c2 = arith.constant 2 : index
    %c0_75 = arith.constant 0 : index
    %c0_76 = arith.constant 0 : index
    %55 = vector.load %arg2[%c2, %c0_75, %c0_76] : memref<4x8x16xf32, #tpu.memory_space<vmem>>, vector<1x8x16xf32>
    %56 = vector.shape_cast %55 : vector<1x8x16xf32> to vector<8x16xf32>
    %c0_77 = arith.constant 0 : index
    %c0_78 = arith.constant 0 : index
    %57 = vector.load %arg5[%c0_77, %c0_78] : memref<16x272xf32, #tpu.memory_space<vmem>>, vector<16x272xf32>
    %cst_79 = arith.constant dense<0.000000e+00> : vector<8x272xf32>
    %58 = tpu.matmul %56, %57, %cst_79 {dimension_numbers = #tpu.dot_dimension_numbers<[1], [0], [0], [1], [0, 0, 1, 1], [], []>} : vector<8x16xf32>, vector<16x272xf32>, vector<8x272xf32> -> vector<8x272xf32>
    %59 = vector.broadcast %0 : vector<8x1xf32> to vector<8x272xf32>
    %60 = arith.addf %58, %59 : vector<8x272xf32>
    %c0_80 = arith.constant 0 : index
    %c2_81 = arith.constant 2 : index
    %c0_82 = arith.constant 0 : index
    %c0_83 = arith.constant 0 : index
    %61 = vector.load %arg4[%c0_80, %c2_81, %c0_82, %c0_83] : memref<1x4x8x272xf32, #tpu.memory_space<vmem>>, vector<1x1x8x272xf32>
    %62 = vector.shape_cast %61 : vector<1x1x8x272xf32> to vector<8x272xf32>
    %63 = vector.shape_cast %60 : vector<8x272xf32> to vector<1x1x8x272xf32>
    tpu.vector_store %arg4[%c0_80, %c2_81, %c0_82, %c0_83], %63 {strides = array<i32>} : memref<1x4x8x272xf32, #tpu.memory_space<vmem>>, vector<1x1x8x272xf32>,
    %c0_84 = arith.constant 0 : index
    %c0_85 = arith.constant 0 : index
    %c0_86 = arith.constant 0 : index
    %64 = vector.load %arg1[%c0_84, %c0_85, %c0_86] : memref<1x4x306xf32, #tpu.memory_space<vmem>>, vector<1x4x272xf32>
    %65 = vector.shape_cast %64 : vector<1x4x272xf32> to vector<4x272xf32>
    %c0_87 = arith.constant 0 : index
    %c0_88 = arith.constant 0 : index
    %66 = vector.load %arg5[%c0_87, %c0_88] : memref<16x272xf32, #tpu.memory_space<vmem>>, vector<4x272xf32>
    tpu.vector_store %arg5[%c0_87, %c0_88], %65 {strides = array<i32>} : memref<16x272xf32, #tpu.memory_space<vmem>>, vector<4x272xf32>,
    %c0_89 = arith.constant 0 : index
    %c0_90 = arith.constant 0 : index
    %c1_91 = arith.constant 1 : index
    %67 = vector.load %arg1[%c0_89, %c0_90, %c1_91] : memref<1x4x306xf32, #tpu.memory_space<vmem>>, vector<1x4x272xf32>
    %68 = vector.shape_cast %67 : vector<1x4x272xf32> to vector<4x272xf32>
    %c4_92 = arith.constant 4 : index
    %c0_93 = arith.constant 0 : index
    %69 = vector.load %arg5[%c4_92, %c0_93] : memref<16x272xf32, #tpu.memory_space<vmem>>, vector<4x272xf32>
    tpu.vector_store %arg5[%c4_92, %c0_93], %68 {strides = array<i32>} : memref<16x272xf32, #tpu.memory_space<vmem>>, vector<4x272xf32>,
    %c0_94 = arith.constant 0 : index
    %c0_95 = arith.constant 0 : index
    %c17_96 = arith.constant 17 : index
    %70 = vector.load %arg1[%c0_94, %c0_95, %c17_96] : memref<1x4x306xf32, #tpu.memory_space<vmem>>, vector<1x4x272xf32>
    %71 = vector.shape_cast %70 : vector<1x4x272xf32> to vector<4x272xf32>
    %c8_97 = arith.constant 8 : index
    %c0_98 = arith.constant 0 : index
    %72 = vector.load %arg5[%c8_97, %c0_98] : memref<16x272xf32, #tpu.memory_space<vmem>>, vector<4x272xf32>
    tpu.vector_store %arg5[%c8_97, %c0_98], %71 {strides = array<i32>} : memref<16x272xf32, #tpu.memory_space<vmem>>, vector<4x272xf32>,
    %c0_99 = arith.constant 0 : index
    %c0_100 = arith.constant 0 : index
    %c18 = arith.constant 18 : index
    %73 = vector.load %arg1[%c0_99, %c0_100, %c18] : memref<1x4x306xf32, #tpu.memory_space<vmem>>, vector<1x4x272xf32>
    %74 = vector.shape_cast %73 : vector<1x4x272xf32> to vector<4x272xf32>
    %c12_101 = arith.constant 12 : index
    %c0_102 = arith.constant 0 : index
    %75 = vector.load %arg5[%c12_101, %c0_102] : memref<16x272xf32, #tpu.memory_space<vmem>>, vector<4x272xf32>
    tpu.vector_store %arg5[%c12_101, %c0_102], %74 {strides = array<i32>} : memref<16x272xf32, #tpu.memory_space<vmem>>, vector<4x272xf32>,
    %c3 = arith.constant 3 : index
    %c0_103 = arith.constant 0 : index
    %c0_104 = arith.constant 0 : index
    %76 = vector.load %arg2[%c3, %c0_103, %c0_104] : memref<4x8x16xf32, #tpu.memory_space<vmem>>, vector<1x8x16xf32>
    %77 = vector.shape_cast %76 : vector<1x8x16xf32> to vector<8x16xf32>
    %c0_105 = arith.constant 0 : index
    %c0_106 = arith.constant 0 : index
    %78 = vector.load %arg5[%c0_105, %c0_106] : memref<16x272xf32, #tpu.memory_space<vmem>>, vector<16x272xf32>
    %cst_107 = arith.constant dense<0.000000e+00> : vector<8x272xf32>
    %79 = tpu.matmul %77, %78, %cst_107 {dimension_numbers = #tpu.dot_dimension_numbers<[1], [0], [0], [1], [0, 0, 1, 1], [], []>} : vector<8x16xf32>, vector<16x272xf32>, vector<8x272xf32> -> vector<8x272xf32>
    %80 = vector.broadcast %0 : vector<8x1xf32> to vector<8x272xf32>
    %81 = arith.addf %79, %80 : vector<8x272xf32>
    %c0_108 = arith.constant 0 : index
    %c3_109 = arith.constant 3 : index
    %c0_110 = arith.constant 0 : index
    %c0_111 = arith.constant 0 : index
    %82 = vector.load %arg4[%c0_108, %c3_109, %c0_110, %c0_111] : memref<1x4x8x272xf32, #tpu.memory_space<vmem>>, vector<1x1x8x272xf32>
    %83 = vector.shape_cast %82 : vector<1x1x8x272xf32> to vector<8x272xf32>
    %84 = vector.shape_cast %81 : vector<8x272xf32> to vector<1x1x8x272xf32>
    tpu.vector_store %arg4[%c0_108, %c3_109, %c0_110, %c0_111], %84 {strides = array<i32>} : memref<1x4x8x272xf32, #tpu.memory_space<vmem>>, vector<1x1x8x272xf32>,
    return
  }
  func.func @transform_0(%arg0: i32) -> (i32, i32, i32) {
    %c0_i32 = arith.constant 0 : i32
    %c0_i32_0 = arith.constant 0 : i32
    %c0_i32_1 = arith.constant 0 : i32
    return %arg0, %c0_i32, %c0_i32_0 : i32, i32, i32
  }
  func.func @transform_1(%arg0: i32) -> (i32, i32, i32) {
    %c0_i32 = arith.constant 0 : i32
    %c0_i32_0 = arith.constant 0 : i32
    %c0_i32_1 = arith.constant 0 : i32
    %c0_i32_2 = arith.constant 0 : i32
    return %c0_i32, %c0_i32_0, %c0_i32_1 : i32, i32, i32
  }
  func.func @transform_2(%arg0: i32) -> (i32, i32) {
    %c0_i32 = arith.constant 0 : i32
    %c0_i32_0 = arith.constant 0 : i32
    %c0_i32_1 = arith.constant 0 : i32
    return %c0_i32, %c0_i32_0 : i32, i32
  }
  func.func @transform_3(%arg0: i32) -> (i32, i32, i32, i32) {
    %c0_i32 = arith.constant 0 : i32
    %c0_i32_0 = arith.constant 0 : i32
    %c0_i32_1 = arith.constant 0 : i32
    %c0_i32_2 = arith.constant 0 : i32
    return %arg0, %c0_i32, %c0_i32_0, %c0_i32_1 : i32, i32, i32, i32
  }
}

</mosaic_0001>

<bundles_post_ra>
// kernel: conv_transpose2d_pallas.1
= control target key start
LH: loop header
LB: loop body
LE: loop exit
PB: predicated region body
PF: predicated region fallthrough
CT: control target
= control target key end

     0   :  { %s920_s12 = smov 0   ;;  %s1131_s0 = inlined_call_operand.vmem [shape: f32[2,4,306], index: 0, kind: input, shape index: {}]   ;;  %s1132_s1 = inlined_call_operand.vmem [shape: f32[4,8,16], index: 1, kind: input, shape index: {}]   ;;  %s1133_s2 = inlined_call_operand.vmem [shape: f32[8,1], index: 2, kind: input, shape index: {}]   ;;  %s1134_s3 = inlined_call_operand.vmem [shape: f32[2,4,8,272], index: 3, kind: output, shape index: {}]  }
   0x1 LB: > { %s840_s13 = sadd.s32 4294967295, %s894_s12   ;;  %p844_p0 = scmp.ge.s32.totalorder %s894_s12, 1  ;;  %s894_s12 = sphi %s920_s12, %s13_s12  }
   0x2   : > { %p137_p1 = scmp.lt.s32.totalorder %s894_s12, 3 }
   0x4   : > { %p138_p2 = pnand %p844_p0, %p137_p1 }
   0x5   : > { %p161_p3 = scmp.lt.s32.totalorder (!%p138_p2), %s840_s13, 1  ;;  %s896_s18 = smov (!%p138_p2), 127  }
   0x6   : > { %141 = sbr.rel (%p138_p2) target bundleno = 410 (0x19a), region = 32  ;;  %s897_s19 = smov (!%p138_p2), 111  }
   0x7   : > { %s898_s20 = smov (!%p138_p2), 110  }
   0xb   : > { %s1136_s13 = smov (!%p161_p3, %s840_s13), 1  ;;  %vm187_vm0 = vcmask 125952   ;;  %vm205_vm1 = vcmask 130052   ;;  %vm352_vm2 = vcmask 1039360   ;;  %vm518_vm3 = vcmask 908288  }
   0xc   : > { %s873_s14 = smul.u32 12, %s1136_s13  ;;  %vm252_vm4 = vcmask 130048   ;;  %vm701_vm5 = vcmask 900096  }
   0xd   : > { %s874_s4 = smul.u32 96, %s1136_s13 }
   0xe   : > { %s934_s17 = scalar_lea.vmem %s1131_s0, %s873_s14 }
   0xf   : > { %v173_v0 = vld [vmem:[%s934_s17 + $0x8] sm:$0xf]  ;;  %v938_v1 = vld [vmem:[%s934_s17] sm:$0xff]  ;;  %s1110_s7 = scalar_lea.vmem %s1134_s3, %s874_s4 }
  0x10   : > { %178 = vst [vmem:[#allocation1 + $0x10] ss:$2 sm:$0xff] %v173_v0  ;;  %v190_v2 = vld [vmem:[%s934_s17 + $0x8] sm:$0xf] }
  0x11   : > { %176 = vst [vmem:[#allocation1] ss:$2 sm:$0xff] %v938_v1  ;;  %v208_v6 = vld [vmem:[%s934_s17 + $0x8] sm:$0xf] }
  0x12   : > { %v224_v10 = vld [vmem:[%s934_s17 + $0x8] sm:$0xf] }
  0x13   : > { %v320_v14 = vld [vmem:[%s934_s17 + $0x8] sm:$0xf] }
  0x14   : > { %v336_v18 = vld [vmem:[%s934_s17 + $0x8] sm:$0xf] }
  0x15   : > { %v362_v22 = vld [vmem:[%s934_s17 + $0x8] sm:$0xf] }
  0x16   : > { %v378_v26 = vld [vmem:[%s934_s17 + $0x8] sm:$0xf] }
  0x17   : > { %v942_v3 = vld.sshfl [vmem:[#allocation1 + $0x10] sm:$0xff pattern:$0x75316420]  ;;  %v470_v30 = vld [vmem:[%s934_s17 + $0x8] sm:$0xf] }
  0x18   : > { %196 = vst [vmem:[#allocation1 + $0x11] ss:$2 sm:$0xff] %v190_v2  ;;  %v179_v4 = vld.sshfl [vmem:[#allocation1] sm:$0xff pattern:$0x75316420] }
  0x19   : > { %v180_v5 = vld.sshfl [vmem:[#allocation1 + $0x8] sm:$0xff pattern:$0x75316420]  ;;  %185 = vst [vmem:[#allocation2] sm:$0xf] %v179_v4 }
  0x1a   : > { %194 = vst [vmem:[#allocation1 + $0x1] ss:$2 sm:$0xff] %v938_v1  ;;  %v486_v34 = vld [vmem:[%s934_s17 + $0x8] sm:$0xf] }
  0x1b   : > { %186 = vst [vmem:[#allocation2 + $0x8] sm:$0xf] %v180_v5  ;;  %v503_v38 = vld [vmem:[%s934_s17 + $0x8] sm:$0xf] }
  0x1c   : > { %v528_v42 = vld [vmem:[%s934_s17 + $0x8] sm:$0xf]  ;;  %188 = vst.msk [vmem:[#allocation2 + $0x10] sm:$0xf] %vm187_vm0, %v942_v3 }
  0x1d   : > { %v620_v46 = vld [vmem:[%s934_s17 + $0x8] sm:$0xf] }
  0x1e   : > { %v636_v50 = vld [vmem:[%s934_s17 + $0x8] sm:$0xf] }
  0x1f   : > { %v946_v7 = vld.sshfl [vmem:[#allocation1 + $0x10] sm:$0xff pattern:$0x75316420]  ;;  %v661_v54 = vld [vmem:[%s934_s17 + $0x8] sm:$0xf] }
  0x20   : > { %213 = vst [vmem:[#allocation1 + $0x10] ss:$2 sm:$0xff] %v208_v6  ;;  %v685_v58 = vld [vmem:[%s934_s17 + $0x8] sm:$0xf] }
  0x21   : > { %v197_v8 = vld.sshfl [vmem:[#allocation1] sm:$0xff pattern:$0x75316420]  ;;  %v198_v9 = vld.sshfl [vmem:[#allocation1 + $0x8] sm:$0xff pattern:$0x75316420] }
  0x22   : > { %211 = vst [vmem:[#allocation1] ss:$2 sm:$0xff] %v938_v1 }
  0x23   : > { %203 = vst [vmem:[#allocation2] sm:$0xf0] %v197_v8 }
  0x24   : > { %204 = vst [vmem:[#allocation2 + $0x8] sm:$0xf0] %v198_v9 }
  0x25   : > { %206 = vst.msk [vmem:[#allocation2 + $0x10] sm:$0xf0] %vm205_vm1, %v946_v7 }
  0x27   : > { %v950_v11 = vld.sshfl [vmem:[#allocation1 + $0x10] sm:$0xff pattern:$0x75316420] }
  0x28   : > { %230 = vst [vmem:[#allocation1 + $0x11] ss:$2 sm:$0xff] %v224_v10 }
  0x29   : > { %v214_v12 = vld.sshfl [vmem:[#allocation1] sm:$0xff pattern:$0x75316420]  ;;  %v215_v13 = vld.sshfl [vmem:[#allocation1 + $0x8] sm:$0xff pattern:$0x75316420] }
  0x2a   : > { %228 = vst [vmem:[#allocation1 + $0x1] ss:$2 sm:$0xff] %v938_v1  ;;  %v241_v3 = vld [vmem:[#allocation2] sm:$0xff] }
  0x2b   : > { %220 = vst [vmem:[#allocation2 + $0x18] sm:$0xf] %v214_v12  ;;  %v242_v4 = vld [vmem:[#allocation2 + $0x8] sm:$0xff] }
  0x2c   : > { %221 = vst [vmem:[#allocation2 + $0x20] sm:$0xf] %v215_v13 }
  0x2d   : > { %222 = vst.msk [vmem:[#allocation2 + $0x28] sm:$0xf] %vm187_vm0, %v950_v11 }
  0x2f   : > { %v954_v15 = vld.sshfl [vmem:[#allocation1 + $0x10] sm:$0xff pattern:$0x75316420] }
  0x30   : > { %325 = vst [vmem:[#allocation1 + $0x10] ss:$2 sm:$0xff] %v320_v14 }
  0x31   : > { %v231_v16 = vld.sshfl [vmem:[#allocation1] sm:$0xff pattern:$0x75316420]  ;;  %v232_v17 = vld.sshfl [vmem:[#allocation1 + $0x8] sm:$0xff pattern:$0x75316420] }
  0x32   : > { %323 = vst [vmem:[#allocation1] ss:$2 sm:$0xff] %v938_v1 }
  0x33   : > { %237 = vst [vmem:[#allocation2 + $0x18] sm:$0xf0] %v231_v16 }
  0x34   : > { %238 = vst [vmem:[#allocation2 + $0x20] sm:$0xf0] %v232_v17 }
  0x35   : > { %239 = vst.msk [vmem:[#allocation2 + $0x28] sm:$0xf0] %vm205_vm1, %v954_v15 }
  0x37   : > { %v958_v19 = vld.sshfl [vmem:[#allocation1 + $0x10] sm:$0xff pattern:$0x75316420] }
  0x38   : > { %342 = vst [vmem:[#allocation1 + $0x11] ss:$2 sm:$0xff] %v336_v18 }
  0x39   : > { %v960_v20 = vld.sshfl [vmem:[#allocation1] sm:$0xff pattern:$0x75316420]  ;;  %v962_v21 = vld.sshfl [vmem:[#allocation1 + $0x8] sm:$0xff pattern:$0x75316420] }
  0x3a   : > { %340 = vst [vmem:[#allocation1 + $0x1] ss:$2 sm:$0xff] %v938_v1  ;;  %v244_v11 = vld [vmem:[#allocation2 + $0x18] sm:$0xff] }
  0x3b   : > { %v245_v2 = vld [vmem:[#allocation2 + $0x20] sm:$0xff]  ;;  %332 = vst [vmem:[#allocation2] sm:$0xf] %v960_v20  ;;  %270 = vmatpush.msra.mxu0 %v244_v11 }
  0x3c   : > { %290 = vmatpush.msra.mxu1 %v245_v2  ;;  %v246_v5 = vld [vmem:[#allocation2 + $0x28] sm:$0xff]  ;;  %333 = vst [vmem:[#allocation2 + $0x8] sm:$0xf] %v962_v21 }
  0x3d   : > { %310 = vmatpush.msra.mxu2 %v246_v5  ;;  %271 = vmatpush.msra.mxu0 %v241_v3 }
  0x3e   : > { %291 = vmatpush.msra.mxu1 %v242_v4 }
  0x3f   : > { %v345_v23 = vld.sshfl [vmem:[#allocation1 + $0x10] sm:$0xff pattern:$0x75316420] }
  0x40   : > { %350 = vrot.lane.b32.xlu1 %v345_v23, %s896_s18  ;;  %367 = vst [vmem:[#allocation1 + $0x10] ss:$2 sm:$0xff] %v362_v22 }
  0x41   : > { %v343_v24 = vld.sshfl [vmem:[#allocation1] sm:$0xff pattern:$0x75316420]  ;;  %v344_v25 = vld.sshfl [vmem:[#allocation1 + $0x8] sm:$0xff pattern:$0x75316420] }
  0x42   : > { %346 = vrot.lane.b32.xlu0 %v343_v24, %s896_s18  ;;  %365 = vst [vmem:[#allocation1] ss:$2 sm:$0xff] %v938_v1 }
  0x47   : > { %v970_v27 = vld.sshfl [vmem:[#allocation1 + $0x10] sm:$0xff pattern:$0x75316420] }
  0x48   : > { %384 = vst [vmem:[#allocation1 + $0x11] ss:$2 sm:$0xff] %v378_v26 }
  0x49   : > { %v972_v28 = vld.sshfl [vmem:[#allocation1] sm:$0xff pattern:$0x75316420]  ;;  %v974_v29 = vld.sshfl [vmem:[#allocation1 + $0x8] sm:$0xff pattern:$0x75316420] }
  0x4a   : > { %348 = vrot.lane.b32.xlu0 %v344_v25, %s896_s18  ;;  %382 = vst [vmem:[#allocation1 + $0x1] ss:$2 sm:$0xff] %v938_v1  ;;  %v240_v25 = vld [vmem:[%s1132_s1] sm:$0xff] }
  0x4b   : > { %375 = vst [vmem:[#allocation2 + $0x20] sm:$0xf] %v974_v29  ;;  %847 = vmatmul.msk.f32.vlgmr.msra.gmra.mxu0 %vm252_vm4, %v240_v25  ;;  %848 = vmatmul.msk.f32.vlgmr.msra.gmra.mxu1 %vm252_vm4, %v240_v25 }
  0x4c   : > { %376 = vst.msk [vmem:[#allocation2 + $0x28] sm:$0xf] %vm187_vm0, %v970_v27 }
  0x4d   : > { %374 = vst [vmem:[#allocation2 + $0x18] sm:$0xf] %v972_v28 }
  0x4f   : > { %v979_v31 = vld.sshfl [vmem:[#allocation1 + $0x10] sm:$0xff pattern:$0x75316420] }
  0x50   : > { %475 = vst [vmem:[#allocation1 + $0x10] ss:$2 sm:$0xff] %v470_v30  ;;  %v850_v30 = vld [vmem:[%s1132_s1 + $0x8] sm:$0xff] }
  0x51   : > { %v981_v32 = vld.sshfl [vmem:[#allocation1] sm:$0xff pattern:$0x75316420]  ;;  %v983_v33 = vld.sshfl [vmem:[#allocation1 + $0x8] sm:$0xff pattern:$0x75316420] }
  0x52   : > { %473 = vst [vmem:[#allocation1] ss:$2 sm:$0xff] %v938_v1 }
  0x53   : > { %392 = vst [vmem:[#allocation2 + $0x20] sm:$0xf0] %v983_v33 }
  0x54   : > { %393 = vst.msk [vmem:[#allocation2 + $0x28] sm:$0xf0] %vm205_vm1, %v979_v31 }
  0x55   : > { %391 = vst [vmem:[#allocation2 + $0x18] sm:$0xf0] %v981_v32  ;;  %v857_v32 = vld [vmem:[%s1132_s1 + $0x10] sm:$0xff] }
  0x57   : > { %v987_v35 = vld.sshfl [vmem:[#allocation1 + $0x10] sm:$0xff pattern:$0x75316420] }
  0x58   : > { %492 = vst [vmem:[#allocation1 + $0x11] ss:$2 sm:$0xff] %v486_v34  ;;  %v899_v34 = vmov 0  }
  0x59   : > { %v989_v36 = vld.sshfl [vmem:[#allocation1] sm:$0xff pattern:$0x75316420]  ;;  %v991_v37 = vld.sshfl [vmem:[#allocation1 + $0x8] sm:$0xff pattern:$0x75316420]  ;;  %887 = vset.pattern.permute.xlu0 %v899_v34 }
  0x5a   : > { %490 = vst [vmem:[#allocation1 + $0x1] ss:$2 sm:$0xff] %v938_v1  ;;  %v400_v6 = vld [vmem:[#allocation2 + $0x20] sm:$0xff] }
  0x5b   : > { %v401_v9 = vld [vmem:[#allocation2 + $0x28] sm:$0xff]  ;;  %439 = vmatpush.msrb.mxu0 %v400_v6 }
  0x5c   : > { %459 = vmatpush.msrb.mxu1 %v401_v9  ;;  %v399_v15 = vld [vmem:[#allocation2 + $0x18] sm:$0xff] }
  0x5d   : > { %419 = vmatpush.msra.mxu3 %v399_v15 }
  0x5f   : > { %v995_v39 = vld.sshfl [vmem:[#allocation1 + $0x10] sm:$0xff pattern:$0x75316420] }
  0x60   : > { %508 = vst [vmem:[#allocation1 + $0x10] ss:$2 sm:$0xff] %v503_v38 }
  0x61   : > { %v997_v40 = vld.sshfl [vmem:[#allocation1] sm:$0xff pattern:$0x75316420]  ;;  %v999_v41 = vld.sshfl [vmem:[#allocation1 + $0x8] sm:$0xff pattern:$0x75316420] }
  0x62   : > { %506 = vst [vmem:[#allocation1] ss:$2 sm:$0xff] %v938_v1 }
  0x67   : > { %v511_v43 = vld.sshfl [vmem:[#allocation1 + $0x10] sm:$0xff pattern:$0x75316420] }
  0x68   : > { %534 = vst [vmem:[#allocation1 + $0x11] ss:$2 sm:$0xff] %v528_v42 }
  0x69   : > { %v509_v44 = vld.sshfl [vmem:[#allocation1] sm:$0xff pattern:$0x75316420]  ;;  %v510_v45 = vld.sshfl [vmem:[#allocation1 + $0x8] sm:$0xff pattern:$0x75316420] }
  0x6a   : > { %512 = vrot.lane.b32.xlu1 %v509_v44, %s897_s19  ;;  %514 = vrot.lane.b32.xlu2 %v510_v45, %s897_s19  ;;  %532 = vst [vmem:[#allocation1 + $0x1] ss:$2 sm:$0xff] %v938_v1 }
  0x6f   : > { %v1007_v47 = vld.sshfl [vmem:[#allocation1 + $0x10] sm:$0xff pattern:$0x75316420] }
  0x70   : > { %625 = vst [vmem:[#allocation1 + $0x10] ss:$2 sm:$0xff] %v620_v46 }
  0x71   : > { %v1009_v48 = vld.sshfl [vmem:[#allocation1] sm:$0xff pattern:$0x75316420]  ;;  %v536_v49 = vld.sshfl [vmem:[#allocation1 + $0x8] sm:$0xff pattern:$0x75316420] }
  0x72   : > { %623 = vst [vmem:[#allocation1] ss:$2 sm:$0xff] %v938_v1  ;;  %516 = vrot.lane.b32.xlu2 %v511_v43, %s897_s19 }
  0x73   : > { %542 = vst [vmem:[#allocation2 + $0x20] sm:$0xf0] %v536_v49 }
  0x74   : > { %543 = vst.msk [vmem:[#allocation2 + $0x28] sm:$0xf0] %vm205_vm1, %v1007_v47 }
  0x75   : > { %541 = vst [vmem:[#allocation2 + $0x18] sm:$0xf0] %v1009_v48 }
  0x77   : > { %v1014_v51 = vld.sshfl [vmem:[#allocation1 + $0x10] sm:$0xff pattern:$0x75316420] }
  0x78   : > { %642 = vst [vmem:[#allocation1 + $0x11] ss:$2 sm:$0xff] %v636_v50 }
  0x79   : > { %v1016_v52 = vld.sshfl [vmem:[#allocation1] sm:$0xff pattern:$0x75316420]  ;;  %v1018_v53 = vld.sshfl [vmem:[#allocation1 + $0x8] sm:$0xff pattern:$0x75316420] }
  0x7a   : > { %640 = vst [vmem:[#allocation1 + $0x1] ss:$2 sm:$0xff] %v938_v1 }
  0x7f   : > { %v645_v55 = vld.sshfl [vmem:[#allocation1 + $0x10] sm:$0xff pattern:$0x75316420] }
  0x80   : > { %666 = vst [vmem:[#allocation1 + $0x10] ss:$2 sm:$0xff] %v661_v54  ;;  %650 = vrot.lane.b32.xlu2 %v645_v55, %s896_s18 }
  0x81   : > { %v644_v56 = vld.sshfl [vmem:[#allocation1 + $0x8] sm:$0xff pattern:$0x75316420]  ;;  %v643_v57 = vld.sshfl [vmem:[#allocation1] sm:$0xff pattern:$0x75316420] }
  0x82   : > { %648 = vrot.lane.b32.xlu1 %v644_v56, %s896_s18  ;;  %664 = vst [vmem:[#allocation1] ss:$2 sm:$0xff] %v938_v1 }
  0x87   : > { %v669_v59 = vld.sshfl [vmem:[#allocation1 + $0x10] sm:$0xff pattern:$0x75316420] }
  0x88   : > { %691 = vst [vmem:[#allocation1 + $0x11] ss:$2 sm:$0xff] %v685_v58 }
  0x89   : > { %v668_v60 = vld.sshfl [vmem:[#allocation1 + $0x8] sm:$0xff pattern:$0x75316420]  ;;  %v667_v61 = vld.sshfl [vmem:[#allocation1] sm:$0xff pattern:$0x75316420] }
  0x8a   : > { %674 = vrot.lane.b32.xlu1 %v669_v59, %s897_s19  ;;  %672 = vrot.lane.b32.xlu0 %v668_v60, %s897_s19  ;;  %689 = vst [vmem:[#allocation1 + $0x1] ss:$2 sm:$0xff] %v938_v1  ;;  %v243_v1 = vld [vmem:[#allocation2 + $0x10] sm:$0xff] }
  0x8b   : > { %334 = vst.msk [vmem:[#allocation2 + $0x10] sm:$0xf] %vm187_vm0, %v958_v19  ;;  %311 = vmatpush.msra.mxu2 %v243_v1 }
  0x8c   : > { %849 = vmatmul.msk.f32.vlgmr.msra.gmra.mxu2 %vm252_vm4, %v240_v25 }
  0x8f   : > { %v694_v62 = vld.sshfl [vmem:[#allocation1 + $0x10] sm:$0xff pattern:$0x75316420] }
  0x91   : > { %v692_v63 = vld.sshfl [vmem:[#allocation1] sm:$0xff pattern:$0x75316420]  ;;  %v693_v0 = vld.sshfl [vmem:[#allocation1 + $0x8] sm:$0xff pattern:$0x75316420] }
  0x92   : > { %699 = vrot.lane.b32.xlu0 %v694_v62, %s898_s20  ;;  %695 = vrot.lane.b32.xlu1 %v692_v63, %s898_s20 }
  0x93   : > { %697 = vrot.lane.b32.xlu2 %v693_v0, %s898_s20 }
  0x9a   : > { %670 = vrot.lane.b32.xlu0 %v667_v61, %s897_s19 }
  0x9b   : > { %646 = vrot.lane.b32.xlu2 %v643_v57, %s896_s18 }
  0xb2   : > { %v351_v7 = vpop.permute.xlu1 %350 }
  0xb3   : > { %360 = vst.msk [vmem:[#allocation2 + $0x10] sm:$0xf0] %vm205_vm1, %v351_v7 }
  0xb4   : > { %v347_v8 = vpop.permute.xlu0 %346 }
  0xba   : > { %v398_v18 = vld [vmem:[#allocation2 + $0x10] sm:$0xff] }
  0xbb   : > { %460 = vmatpush.msrb.mxu1 %v398_v18  ;;  %484 = vst.msk [vmem:[#allocation2 + $0x10] sm:$0xf] %vm187_vm0, %v987_v35  ;;  %v171_v35 = vld [vmem:[%s1133_s2] sm:$0xff] }
  0xbc   : > { %v349_v10 = vpop.permute.xlu0 %348  ;;  %501 = vst.msk [vmem:[#allocation2 + $0x10] sm:$0xf0] %vm205_vm1, %v995_v39  ;;  %853 = vmatmul.msk.f32.vlgmr.msrb.gmra.mxu1 %vm252_vm4, %v850_v30  ;;  %249 = vperm.xlu0 %887, %v171_v35  }
  0xbd   : > { %v353_v12 = vsel %vm352_vm2, %v347_v8, %v349_v10  ;;  %v354_v13 = vsel %vm352_vm2, %v349_v10, %v351_v7 }
  0xbe   : > { %358 = vst [vmem:[#allocation2] sm:$0xf0] %v353_v12 }
  0xbf   : > { %359 = vst [vmem:[#allocation2 + $0x8] sm:$0xf0] %v354_v13 }
  0xc3   : > { %v548_v24 = vld [vmem:[#allocation2 + $0x10] sm:$0xff] }
  0xc4   : > { %v515_v14 = vpop.permute.xlu2 %514  ;;  %634 = vst.msk [vmem:[#allocation2 + $0x10] sm:$0xf] %vm187_vm0, %v1014_v51  ;;  %v864_v51 = vld [vmem:[%s1132_s1 + $0x18] sm:$0xff] }
  0xc5   : > { %v396_v19 = vld [vmem:[#allocation2] sm:$0xff] }
  0xc6   : > { %v397_v20 = vld [vmem:[#allocation2 + $0x8] sm:$0xff]  ;;  %420 = vmatpush.msra.mxu3 %v396_v19  ;;  %482 = vst [vmem:[#allocation2] sm:$0xf] %v989_v36 }
  0xc7   : > { %440 = vmatpush.msrb.mxu0 %v397_v20  ;;  %499 = vst [vmem:[#allocation2] sm:$0xf0] %v997_v40  ;;  %851 = vmatmul.msk.f32.vlgmr.msra.gmra.mxu3 %vm252_vm4, %v850_v30 }
  0xc8   : > { %483 = vst [vmem:[#allocation2 + $0x8] sm:$0xf] %v991_v37  ;;  %852 = vmatmul.msk.f32.vlgmr.msrb.gmra.mxu0 %vm252_vm4, %v850_v30  ;;  %v273_v56 = vpop.f32.mrf.mxu0  ;;  %v293_v57 = vpop.f32.mrf.mxu1 }
  0xc9   : > { %500 = vst [vmem:[#allocation2 + $0x8] sm:$0xf0] %v999_v41 }
  0xcc   : > { %v517_v16 = vpop.permute.xlu2 %516 }
  0xcd   : > { %v520_v17 = vsel %vm518_vm3, %v515_v14, %v517_v16  ;;  %526 = vst.msk [vmem:[#allocation2 + $0x28] sm:$0xf] %vm187_vm0, %v517_v16 }
  0xce   : > { %525 = vst [vmem:[#allocation2 + $0x20] sm:$0xf] %v520_v17  ;;  %v546_v28 = vld [vmem:[#allocation2] sm:$0xff] }
  0xcf   : > { %632 = vst [vmem:[#allocation2] sm:$0xf] %v1016_v52 }
  0xd0   : > { %v547_v29 = vld [vmem:[#allocation2 + $0x8] sm:$0xff] }
  0xd1   : > { %633 = vst [vmem:[#allocation2 + $0x8] sm:$0xf] %v1018_v53 }
  0xd4   : > { %v551_v26 = vld [vmem:[#allocation2 + $0x28] sm:$0xff] }
  0xd5   : > { %v550_v21 = vld [vmem:[#allocation2 + $0x20] sm:$0xff]  ;;  %609 = vmatpush.msra.mxu0 %v551_v26 }
  0xd6   : > { %589 = vmatpush.msrb.mxu3 %v550_v21 }
  0xd7   : > { %610 = vmatpush.msra.mxu0 %v548_v24 }
  0xd8   : > { %590 = vmatpush.msrb.mxu3 %v547_v29  ;;  %860 = vmatmul.msk.f32.vlgmr.msra.gmra.mxu0 %vm252_vm4, %v857_v32 }
  0xd9   : > { %859 = vmatmul.msk.f32.vlgmr.msrb.gmra.mxu3 %vm252_vm4, %v857_v32 }
  0xda   : > { %v651_v27 = vpop.permute.xlu2 %650 }
  0xdb   : > { %659 = vst.msk [vmem:[#allocation2 + $0x10] sm:$0xf0] %vm205_vm1, %v651_v27 }
  0xdc   : > { %v513_v22 = vpop.permute.xlu1 %512 }
  0xdd   : > { %v519_v23 = vsel %vm518_vm3, %v513_v22, %v515_v14 }
  0xde   : > { %524 = vst [vmem:[#allocation2 + $0x18] sm:$0xf] %v519_v23 }
  0xe2   : > { %v714_v52 = vld [vmem:[#allocation2 + $0x10] sm:$0xff] }
  0xe5   : > { %v549_v31 = vld [vmem:[#allocation2 + $0x18] sm:$0xff] }
  0xe6   : > { %569 = vmatpush.msrb.mxu2 %v549_v31 }
  0xe8   : > { %570 = vmatpush.msrb.mxu2 %v546_v28 }
  0xe9   : > { %858 = vmatmul.msk.f32.vlgmr.msrb.gmra.mxu2 %vm252_vm4, %v857_v32 }
  0xed   : > { %v698_v33 = vpop.permute.xlu2 %697 }
  0xf4   : > { %v649_v36 = vpop.permute.xlu1 %648 }
  0xf5   : > { %v653_v37 = vsel %vm352_vm2, %v649_v36, %v651_v27  ;;  %v647_v38 = vpop.permute.xlu2 %646 }
  0xf6   : > { %v652_v39 = vsel %vm352_vm2, %v647_v38, %v649_v36  ;;  %658 = vst [vmem:[#allocation2 + $0x8] sm:$0xf0] %v653_v37 }
  0xf7   : > { %657 = vst [vmem:[#allocation2] sm:$0xf0] %v652_v39 }
  0xfc   : > { %v675_v40 = vpop.permute.xlu1 %674  ;;  %v673_v41 = vpop.permute.xlu0 %672 }
  0xfd   : > { %v677_v42 = vsel %vm518_vm3, %v673_v41, %v675_v40  ;;  %683 = vst.msk [vmem:[#allocation2 + $0x28] sm:$0xf] %vm187_vm0, %v675_v40  ;;  %v713_v53 = vld [vmem:[#allocation2 + $0x8] sm:$0xff] }
  0xfe   : > { %682 = vst [vmem:[#allocation2 + $0x20] sm:$0xf] %v677_v42  ;;  %v712_v55 = vld [vmem:[#allocation2] sm:$0xff] }
 0x104   : > { %v700_v43 = vpop.permute.xlu0 %699  ;;  %v696_v44 = vpop.permute.xlu1 %695 }
 0x105   : > { %v703_v45 = vsel %vm701_vm5, %v698_v33, %v700_v43  ;;  %709 = vst.msk [vmem:[#allocation2 + $0x28] sm:$0xf0] %vm205_vm1, %v700_v43  ;;  %v702_v46 = vsel %vm701_vm5, %v696_v44, %v698_v33 }
 0x106   : > { %708 = vst [vmem:[#allocation2 + $0x20] sm:$0xf0] %v703_v45 }
 0x107   : > { %707 = vst [vmem:[#allocation2 + $0x18] sm:$0xf0] %v702_v46 }
 0x10c   : > { %v671_v47 = vpop.permute.xlu0 %670  ;;  %v717_v48 = vld [vmem:[#allocation2 + $0x28] sm:$0xff] }
 0x10d   : > { %v676_v49 = vsel %vm518_vm3, %v671_v47, %v673_v41  ;;  %775 = vmatpush.msra.mxu3 %v717_v48  ;;  %v716_v50 = vld [vmem:[#allocation2 + $0x20] sm:$0xff] }
 0x10e   : > { %681 = vst [vmem:[#allocation2 + $0x18] sm:$0xf] %v676_v49  ;;  %755 = vmatpush.msra.mxu2 %v716_v50 }
 0x10f   : > { %776 = vmatpush.msra.mxu3 %v714_v52  ;;  %v313_v58 = vpop.f32.mrf.mxu2 }
 0x110   : > { %756 = vmatpush.msra.mxu2 %v713_v53  ;;  %867 = vmatmul.msk.f32.vlgmr.msra.gmra.mxu3 %vm252_vm4, %v864_v51 }
 0x111   : > { %866 = vmatmul.msk.f32.vlgmr.msra.gmra.mxu2 %vm252_vm4, %v864_v51 }
 0x115   : > { %v715_v54 = vld [vmem:[#allocation2 + $0x18] sm:$0xff] }
 0x116   : > { %735 = vmatpush.msra.mxu1 %v715_v54 }
 0x118   : > { %736 = vmatpush.msra.mxu1 %v712_v55 }
 0x119   : > { %865 = vmatmul.msk.f32.vlgmr.msra.gmra.mxu1 %vm252_vm4, %v864_v51 }
 0x12e   : > { %v250_v60 = vpop.permute.xlu0 %249 }
 0x12f   : > { %v294_v62 = vadd.f32 %v293_v57, %v250_v60  ;;  %v314_v63 = vadd.f32 %v313_v58, %v250_v60  ;;  %v274_v0 = vadd.f32 %v273_v56, %v250_v60 }
 0x131   : > { %317 = vst [vmem:[%s1110_s7 + $0x8] sm:$0xff] %v294_v62 }
 0x132   : > { %318 = vst.msk [vmem:[%s1110_s7 + $0x10] sm:$0xff] %vm252_vm4, %v314_v63 }
 0x133   : > { %316 = vst [vmem:[%s1110_s7] sm:$0xff] %v274_v0 }
 0x139   : > { %v462_v2 = vpop.f32.mrf.mxu1 }
 0x13a   : > { %v463_v3 = vadd.f32 %v462_v2, %v250_v60 }
 0x13c   : > { %856 = vst.msk [vmem:[%s1110_s7 + $0x28] sm:$0xff] %vm252_vm4, %v463_v3 }
 0x145   : > { %v442_v59 = vpop.f32.mrf.mxu0 }
 0x146   : > { %v443_v4 = vadd.f32 %v442_v59, %v250_v60 }
 0x148   : > { %855 = vst [vmem:[%s1110_s7 + $0x20] sm:$0xff] %v443_v4 }
 0x14a   : > { %v422_v61 = vpop.f32.mrf.mxu3 }
 0x14b   : > { %v423_v1 = vadd.f32 %v422_v61, %v250_v60 }
 0x14d   : > { %854 = vst [vmem:[%s1110_s7 + $0x18] sm:$0xff] %v423_v1 }
 0x155   : > { %v612_v5 = vpop.f32.mrf.mxu0 }
 0x156   : > { %v613_v6 = vadd.f32 %v612_v5, %v250_v60 }
 0x158   : > { %863 = vst.msk [vmem:[%s1110_s7 + $0x40] sm:$0xff] %vm252_vm4, %v613_v6 }
 0x15c   : > { %v592_v8 = vpop.f32.mrf.mxu3 }
 0x15d   : > { %v593_v10 = vadd.f32 %v592_v8, %v250_v60 }
 0x15f   : > { %862 = vst [vmem:[%s1110_s7 + $0x38] sm:$0xff] %v593_v10 }
 0x16c   : > { %v572_v7 = vpop.f32.mrf.mxu2 }
 0x16d   : > { %v573_v9 = vadd.f32 %v572_v7, %v250_v60 }
 0x16f   : > { %861 = vst [vmem:[%s1110_s7 + $0x30] sm:$0xff] %v573_v9 }
 0x193   : > { %v778_v11 = vpop.f32.mrf.mxu3 }
 0x194   : > { %v758_v12 = vpop.f32.mrf.mxu2  ;;  %v779_v13 = vadd.f32 %v778_v11, %v250_v60 }
 0x195   : > { %v759_v14 = vadd.f32 %v758_v12, %v250_v60 }
 0x196   : > { %v738_v15 = vpop.f32.mrf.mxu1  ;;  %870 = vst.msk [vmem:[%s1110_s7 + $0x58] sm:$0xff] %vm252_vm4, %v779_v13 }
 0x197   : > { %v739_v16 = vadd.f32 %v738_v15, %v250_v60  ;;  %869 = vst [vmem:[%s1110_s7 + $0x50] sm:$0xff] %v759_v14 }
 0x199   : > { %868 = vst [vmem:[%s1110_s7 + $0x48] sm:$0xff] %v739_v16 }
 0x19a PF: > { %s13_s12 = sadd.s32 1, %s894_s12  }
 0x19b   : > { %p10_p4 = scmp.ge.s32.totalorder %s13_s12, 4  }
 0x19d   :  { %12 = sbr.rel (!%p10_p4) target bundleno = 1 (0x1), region = 92 }

</bundles_post_ra>
